<compile_context>
chip_gen: v6e
topology: v6e:2x2x1
jax: 0.10.0
libtpu: 0.0.40
codegen_flags: <defaults>
</compile_context>

<pallas_src>
import jax
import jax.numpy as jnp
from jax.experimental import pallas as pl
from jax.experimental.pallas import tpu as pltpu

_NEG = -1.0e30  # finite "minus infinity" sentinel (avoids inf-inf -> NaN)


def _round_up(x: int, m: int) -> int:
    return -(-x // m) * m


def _choose_block(b: int, requested: int = 256) -> int:
    """Square tile size: big enough for the 256x256 MXU (v6e/v7x), small enough
    not to blow up padding for small batches, and preferring >= 2 q-blocks
    (two v7x TensorCores) when that costs no extra padding."""
    best = 128
    for cand in (128, 256, 512):
        if cand > requested:
            break
        if _round_up(b, cand) <= max(int(1.25 * b), b + 128):
            best = cand
    while best > 128:
        padded = _round_up(b, best)
        half = best // 2
        if padded // best >= 2 or _round_up(b, half) > padded:
            break
        best = half
    return best


def supcon_loss(features: jax.Array,
                labels: jax.Array,
                *,
                temperature: float = 0.07,
                block: int | None = None,
                normalized: bool = False) -> jax.Array:
    """features: [B, D] float, labels: [B] or [B, 1] int -> scalar float32 loss.

    normalized=True asserts rows of `features` are L2-normalized (standard
    SupCon usage): the logsumexp shift becomes the static constant 1/T, which
    drops the running-max scratch and one XLU reduction per step.
    """
    b, d = features.shape
    if block is None:
        block = _choose_block(b)
    b_pad = _round_up(b, block)
    d_pad = _round_up(d, 128)
    nq = b_pad // block
    nk = b_pad // block

    inv_t = 1.0 / float(temperature)

    # Fold 1/T into the single shared operand once: the bf16 NT dot on the MXU
    # then directly produces logits = <f_i, f_j> / T.  bf16 halves HBM traffic
    # and the double-buffered VMEM footprint (biggest relative win on v5e/v7x).
    scale = inv_t ** 0.5
    feats = features.astype(jnp.float32) * jnp.float32(scale)
    feats_bf = jnp.pad(feats.astype(jnp.bfloat16),
                       ((0, b_pad - b), (0, d_pad - d)))

    # Dense label remap + O(B) positive-count precompute (one fewer per-step
    # XLU reduction in the kernel).  Note: a real label equal to int32 max
    # would collide with the unique() fill value (ignored edge case).
    lab = labels.reshape(-1).astype(jnp.int32)
    uniq = jnp.unique(lab, size=b, fill_value=jnp.iinfo(jnp.int32).max)
    dense = jnp.searchsorted(uniq, lab).astype(jnp.int32)
    counts = jnp.bincount(dense, length=b)
    npos = (counts[dense] - 1).astype(jnp.float32)          # positives excl. self

    lab_row = jnp.pad(dense, (0, b_pad - b), constant_values=-1).reshape(b_pad, 1)
    lab_col = jnp.pad(dense, (0, b_pad - b), constant_values=-2).reshape(1, b_pad)
    npos_p = jnp.pad(npos, (0, b_pad - b)).reshape(b_pad, 1)
    # Additive column mask: 0.0 for real columns, -1e30 for padded columns.
    col_mask = jnp.where(jnp.arange(b_pad) < b, 0.0, _NEG
                         ).astype(jnp.float32).reshape(1, b_pad)

    def kernel(fq_ref, fk_ref, lq_ref, lk_ref, cmask_ref, npos_ref, out_ref,
               *scratch):
        if normalized:
            l_scr, s_scr = scratch
        else:
            m_scr, l_scr, s_scr = scratch

        qi = pl.program_id(0)
        ki = pl.program_id(1)

        @pl.when(ki == 0)
        def _init():
            if not normalized:
                m_scr[...] = jnp.full((block, 1), _NEG, jnp.float32)
            l_scr[...] = jnp.zeros((block, 1), jnp.float32)
            s_scr[...] = jnp.zeros((block, 1), jnp.float32)

        # bf16 NT dot on the MXU (contracts the trailing dim of BOTH operands ->
        # no RHS transpose), f32 accumulation. 1/T is pre-folded -> sim IS logits.
        sim = jax.lax.dot_general(
            fq_ref[...], fk_ref[...],
            dimension_numbers=(((1,), (1,)), ((), ())),
            preferred_element_type=jnp.float32)              # [TQ, TK]
        sim = sim + cmask_ref[...]                           # kill padded columns

        # Self-contrast exclusion (diagonal entries only).
        row_g = qi * block + jax.lax.broadcasted_iota(jnp.int32, (block, block), 0)
        col_g = ki * block + jax.lax.broadcasted_iota(jnp.int32, (block, block), 1)
        not_self = row_g != col_g
        logits = jnp.where(not_self, sim, _NEG)

        # Positive pairs (dense ids; pad sentinels -1/-2 never match real ids).
        pos = jnp.logical_and(lq_ref[...] == lk_ref[...], not_self)

        # sum over positives of the logit (the max shift cancels analytically).
        s_scr[...] += jnp.sum(jnp.where(pos, sim, 0.0), axis=1, keepdims=True)

        if normalized:
            # |<f_i, f_j>| <= 1  =>  logits <= 1/T: static shift, no running max.
            p = jnp.exp(logits - inv_t)                      # masked -> underflow to 0
            l_scr[...] += jnp.sum(p, axis=1, keepdims=True)
        else:
            m_blk = jnp.max(logits, axis=1, keepdims=True)
            m_new = jnp.maximum(m_scr[...], m_blk)
            alpha = jnp.exp(m_scr[...] - m_new)
            p = jnp.exp(logits - m_new)                      # masked -> underflow to 0
            l_scr[...] = alpha * l_scr[...] + jnp.sum(p, axis=1, keepdims=True)
            m_scr[...] = m_new

        @pl.when(ki == pl.num_programs(1) - 1)
        def _finalize():
            if normalized:
                lse = inv_t + jnp.log(l_scr[...])
            else:
                lse = m_scr[...] + jnp.log(l_scr[...])
            n = npos_ref[...]
            ok = n > 0.0          # padded rows and zero-positive anchors -> 0
            mean_log_prob_pos = (s_scr[...] - n * lse) * pl.reciprocal(
                jnp.maximum(n, 1.0), approx=True)
            out_ref[...] = jnp.where(ok, mean_log_prob_pos, 0.0)

    scratch_shapes = [pltpu.VMEM((block, 1), jnp.float32)] * (2 if normalized else 3)

    # Rough VMEM budget: double-buffered bf16 feature tiles + f32 temporaries;
    # clamp to [32 MiB, 64 MiB] so it is safe on v5e/v6e (128 MiB physical) and
    # v7x (64 MiB physical).
    est_vmem = 4 * block * d_pad * 2 + 12 * block * block * 4 + 64 * 1024
    vmem_limit = int(min(max(2 * est_vmem, 32 * 1024 * 1024), 64 * 1024 * 1024))

    cost = pl.CostEstimate(
        flops=2 * b_pad * b_pad * d_pad,
        transcendentals=b_pad * b_pad,
        bytes_accessed=(nq + 1) * b_pad * d_pad * 2 + 6 * b_pad * 4,
    )

    per_row = pl.pallas_call(
        kernel,
        out_shape=jax.ShapeDtypeStruct((b_pad, 1), jnp.float32),
        grid_spec=pltpu.PrefetchScalarGridSpec(
            num_scalar_prefetch=0,
            grid=(nq, nk),
            in_specs=[
                pl.BlockSpec((block, d_pad), lambda qi, ki: (qi, 0)),  # anchor rows (bf16)
                # TODO(synk): consider pipeline_mode=pl.Buffered(3) here on v5e
                # if a profile shows exposed DMA on the streamed contrast tiles.
                pl.BlockSpec((block, d_pad), lambda qi, ki: (ki, 0)),  # contrast rows (bf16)
                pl.BlockSpec((block, 1), lambda qi, ki: (qi, 0)),      # dense labels (rows)
                pl.BlockSpec((1, block), lambda qi, ki: (0, ki)),      # dense labels (cols)
                pl.BlockSpec((1, block), lambda qi, ki: (0, ki)),      # additive col mask
                pl.BlockSpec((block, 1), lambda qi, ki: (qi, 0)),      # positive counts
            ],
            out_specs=pl.BlockSpec((block, 1), lambda qi, ki: (qi, 0)),
            scratch_shapes=scratch_shapes,
        ),
        compiler_params=pltpu.CompilerParams(
            dimension_semantics=("parallel", "arbitrary"),
            vmem_limit_bytes=vmem_limit),
        cost_estimate=cost,
    )(feats_bf, feats_bf, lab_row, lab_col, col_mask, npos_p)

    # Zero-positive anchors contribute 0 but stay in the /B mean (see header).
    return -(jnp.sum(per_row) / b)


def supcon_loss_ref(features, labels, temperature=0.07):
    """Pure-JAX f32 reference mirroring the PyTorch forward."""
    b = features.shape[0]
    labels = labels.reshape(-1)
    mask = (labels.reshape(b, 1) == labels.reshape(1, b)).astype(jnp.float32)
    sim = (features @ features.T) / temperature
    logits = sim - jnp.max(sim, axis=1, keepdims=True)
    logits_mask = 1.0 - jnp.eye(b, dtype=jnp.float32)
    mask = mask * logits_mask
    exp_logits = jnp.exp(logits) * logits_mask
    log_prob = logits - jnp.log(jnp.sum(exp_logits, axis=1, keepdims=True))
    mean_log_prob_pos = jnp.sum(mask * log_prob, axis=1) / jnp.sum(mask, axis=1)
    return -jnp.mean(mean_log_prob_pos)


if __name__ == "__main__":
    key = jax.random.PRNGKey(0)
    k1, k2 = jax.random.split(key)

    # --- small single-block case; exercises the static-shift (normalized) path ---
    B, D = 8, 32
    feats = jax.random.normal(k1, (B, D), dtype=jnp.float32)
    feats = feats / jnp.linalg.norm(feats, axis=1, keepdims=True)
    labels = jnp.array([0, 0, 1, 1, 2, 2, 3, 3], dtype=jnp.int32).reshape(B, 1)

    loss = supcon_loss(feats, labels, normalized=True)
    jax.block_until_ready(loss)
    ref = supcon_loss_ref(feats, labels)
    # bf16 matmul inside the kernel -> relaxed tolerance.
    assert jnp.allclose(loss, ref, atol=3e-2, rtol=3e-2), (loss, ref)

    # --- multi-block case; exercises the tiled online-logsumexp path + padding ---
    B2, D2 = 160, 32
    feats2 = jax.random.normal(k2, (B2, D2), dtype=jnp.float32)
    feats2 = feats2 / jnp.linalg.norm(feats2, axis=1, keepdims=True)
    labels2 = (jnp.arange(B2, dtype=jnp.int32) % 5).reshape(B2, 1)

    loss2 = supcon_loss(feats2, labels2, block=128, normalized=False)
    jax.block_until_ready(loss2)
    ref2 = supcon_loss_ref(feats2, labels2)
    assert jnp.allclose(loss2, ref2, atol=3e-2, rtol=3e-2), (loss2, ref2)

    print("KERNEL_OK")
</pallas_src>

<mosaic_0001>
module attributes {stable_mosaic.version = 11 : i64} {
  func.func @kernel(%arg0: i32, %arg1: i32, %arg2: memref<128x128xbf16, #tpu.memory_space<vmem>>, %arg3: memref<128x128xbf16, #tpu.memory_space<vmem>>, %arg4: memref<128x1xi32, #tpu.memory_space<vmem>>, %arg5: memref<1x128xi32, #tpu.memory_space<vmem>>, %arg6: memref<1x128xf32, #tpu.memory_space<vmem>>, %arg7: memref<128x1xf32, #tpu.memory_space<vmem>>, %arg8: memref<128x1xf32, #tpu.memory_space<vmem>>, %arg9: memref<128x1xf32, #tpu.memory_space<vmem>>, %arg10: memref<128x1xf32, #tpu.memory_space<vmem>>) attributes {dimension_semantics = [#tpu.dimension_semantics<parallel>, #tpu.dimension_semantics<arbitrary>], iteration_bounds = array<i64: 1, 1>, scalar_prefetch = 0 : i64, scratch_operands = 2 : i64, tpu.core_type = #tpu.core_type<tc>, window_params = [{transform_indices = @transform_0, window_bounds = array<i64: 128, 128>}, {transform_indices = @transform_1, window_bounds = array<i64: 128, 128>}, {transform_indices = @transform_2, window_bounds = array<i64: 128, 1>}, {transform_indices = @transform_3, window_bounds = array<i64: 1, 128>}, {transform_indices = @transform_4, window_bounds = array<i64: 1, 128>}, {transform_indices = @transform_5, window_bounds = array<i64: 128, 1>}, {transform_indices = @transform_6, window_bounds = array<i64: 128, 1>}]} {
    %c0_i32 = arith.constant 0 : i32
    %0 = arith.cmpi eq, %arg1, %c0_i32 : i32
    %1 = arith.extui %0 : i1 to i32
    %c0_i32_0 = arith.constant 0 : i32
    %2 = arith.cmpi ne, %1, %c0_i32_0 : i32
    scf.if %2 {
      %cst_26 = arith.constant 0.000000e+00 : f32
      %44 = vector.broadcast %cst_26 : f32 to vector<128x1xf32>
      %c0_27 = arith.constant 0 : index
      %c0_28 = arith.constant 0 : index
      %45 = vector.load %arg9[%c0_27, %c0_28] : memref<128x1xf32, #tpu.memory_space<vmem>>, vector<128x1xf32>
      tpu.vector_store %arg9[%c0_27, %c0_28], %44 {strides = array<i32>} : memref<128x1xf32, #tpu.memory_space<vmem>>, vector<128x1xf32>,
      %cst_29 = arith.constant 0.000000e+00 : f32
      %46 = vector.broadcast %cst_29 : f32 to vector<128x1xf32>
      %c0_30 = arith.constant 0 : index
      %c0_31 = arith.constant 0 : index
      %47 = vector.load %arg10[%c0_30, %c0_31] : memref<128x1xf32, #tpu.memory_space<vmem>>, vector<128x1xf32>
      tpu.vector_store %arg10[%c0_30, %c0_31], %46 {strides = array<i32>} : memref<128x1xf32, #tpu.memory_space<vmem>>, vector<128x1xf32>,
    } else {
    }
    %c0 = arith.constant 0 : index
    %c0_1 = arith.constant 0 : index
    %3 = vector.load %arg2[%c0, %c0_1] : memref<128x128xbf16, #tpu.memory_space<vmem>>, vector<128x128xbf16>
    %c0_2 = arith.constant 0 : index
    %c0_3 = arith.constant 0 : index
    %4 = vector.load %arg3[%c0_2, %c0_3] : memref<128x128xbf16, #tpu.memory_space<vmem>>, vector<128x128xbf16>
    %cst = arith.constant dense<0.000000e+00> : vector<128x128xf32>
    %5 = tpu.matmul %3, %4, %cst {dimension_numbers = #tpu.dot_dimension_numbers<[1], [1], [0], [0], [0, 0, 1, 0], [], []>} : vector<128x128xbf16>, vector<128x128xbf16>, vector<128x128xf32> -> vector<128x128xf32>
    %c0_4 = arith.constant 0 : index
    %c0_5 = arith.constant 0 : index
    %6 = vector.load %arg6[%c0_4, %c0_5] : memref<1x128xf32, #tpu.memory_space<vmem>>, vector<1x128xf32>
    %7 = vector.broadcast %6 : vector<1x128xf32> to vector<128x128xf32>
    %8 = arith.addf %5, %7 : vector<128x128xf32>
    %c128_i32 = arith.constant 128 : i32
    %9 = arith.muli %arg0, %c128_i32 : i32
    %10 = tpu.iota {dimensions = array<i32: 0>} : vector<128x128xi32>
    %11 = vector.broadcast %9 : i32 to vector<128x128xi32>
    %12 = arith.addi %11, %10 : vector<128x128xi32>
    %c128_i32_6 = arith.constant 128 : i32
    %13 = arith.muli %arg1, %c128_i32_6 : i32
    %14 = tpu.iota {dimensions = array<i32: 1>} : vector<128x128xi32>
    %15 = vector.broadcast %13 : i32 to vector<128x128xi32>
    %16 = arith.addi %15, %14 : vector<128x128xi32>
    %17 = arith.cmpi ne, %12, %16 : vector<128x128xi32>
    %cst_7 = arith.constant -1.000000e+30 : f32
    %18 = vector.broadcast %cst_7 : f32 to vector<128x128xf32>
    %19 = arith.select %17, %8, %18 : vector<128x128xi1>, vector<128x128xf32>
    %c0_8 = arith.constant 0 : index
    %c0_9 = arith.constant 0 : index
    %20 = vector.load %arg4[%c0_8, %c0_9] : memref<128x1xi32, #tpu.memory_space<vmem>>, vector<128x1xi32>
    %c0_10 = arith.constant 0 : index
    %c0_11 = arith.constant 0 : index
    %21 = vector.load %arg5[%c0_10, %c0_11] : memref<1x128xi32, #tpu.memory_space<vmem>>, vector<1x128xi32>
    %22 = vector.broadcast %20 : vector<128x1xi32> to vector<128x128xi32>
    %23 = vector.broadcast %21 : vector<1x128xi32> to vector<128x128xi32>
    %24 = arith.cmpi eq, %22, %23 : vector<128x128xi32>
    %25 = arith.andi %24, %17 : vector<128x128xi1>
    %c0_12 = arith.constant 0 : index
    %c0_13 = arith.constant 0 : index
    %26 = vector.load %arg10[%c0_12, %c0_13] : memref<128x1xf32, #tpu.memory_space<vmem>>, vector<128x1xf32>
    %cst_14 = arith.constant 0.000000e+00 : f32
    %27 = vector.broadcast %cst_14 : f32 to vector<128x128xf32>
    %28 = arith.select %25, %8, %27 : vector<128x128xi1>, vector<128x128xf32>
    %cst_15 = arith.constant dense<0.000000e+00> : vector<128xf32>
    %29 = vector.multi_reduction <add>, %28, %cst_15 [1] : vector<128x128xf32> to vector<128xf32>
    %30 = vector.shape_cast %29 : vector<128xf32> to vector<128x1xf32>
    %31 = arith.addf %26, %30 : vector<128x1xf32>
    %c0_16 = arith.constant 0 : index
    %c0_17 = arith.constant 0 : index
    %32 = vector.load %arg10[%c0_16, %c0_17] : memref<128x1xf32, #tpu.memory_space<vmem>>, vector<128x1xf32>
    tpu.vector_store %arg10[%c0_16, %c0_17], %31 {strides = array<i32>} : memref<128x1xf32, #tpu.memory_space<vmem>>, vector<128x1xf32>,
    %cst_18 = arith.constant 14.2857141 : f32
    %33 = vector.broadcast %cst_18 : f32 to vector<128x128xf32>
    %34 = arith.subf %19, %33 : vector<128x128xf32>
    %35 = math.exp %34 : vector<128x128xf32>
    %c0_19 = arith.constant 0 : index
    %c0_20 = arith.constant 0 : index
    %36 = vector.load %arg9[%c0_19, %c0_20] : memref<128x1xf32, #tpu.memory_space<vmem>>, vector<128x1xf32>
    %cst_21 = arith.constant dense<0.000000e+00> : vector<128xf32>
    %37 = vector.multi_reduction <add>, %35, %cst_21 [1] : vector<128x128xf32> to vector<128xf32>
    %38 = vector.shape_cast %37 : vector<128xf32> to vector<128x1xf32>
    %39 = arith.addf %36, %38 : vector<128x1xf32>
    %c0_22 = arith.constant 0 : index
    %c0_23 = arith.constant 0 : index
    %40 = vector.load %arg9[%c0_22, %c0_23] : memref<128x1xf32, #tpu.memory_space<vmem>>, vector<128x1xf32>
    tpu.vector_store %arg9[%c0_22, %c0_23], %39 {strides = array<i32>} : memref<128x1xf32, #tpu.memory_space<vmem>>, vector<128x1xf32>,
    %c0_i32_24 = arith.constant 0 : i32
    %41 = arith.cmpi eq, %arg1, %c0_i32_24 : i32
    %42 = arith.extui %41 : i1 to i32
    %c0_i32_25 = arith.constant 0 : i32
    %43 = arith.cmpi ne, %42, %c0_i32_25 : i32
    scf.if %43 {
      %c0_26 = arith.constant 0 : index
      %c0_27 = arith.constant 0 : index
      %44 = vector.load %arg9[%c0_26, %c0_27] : memref<128x1xf32, #tpu.memory_space<vmem>>, vector<128x1xf32>
      %45 = math.log %44 : vector<128x1xf32>
      %cst_28 = arith.constant 14.2857141 : f32
      %46 = vector.broadcast %cst_28 : f32 to vector<128x1xf32>
      %47 = arith.addf %46, %45 : vector<128x1xf32>
      %c0_29 = arith.constant 0 : index
      %c0_30 = arith.constant 0 : index
      %48 = vector.load %arg7[%c0_29, %c0_30] : memref<128x1xf32, #tpu.memory_space<vmem>>, vector<128x1xf32>
      %cst_31 = arith.constant 0.000000e+00 : f32
      %49 = vector.broadcast %cst_31 : f32 to vector<128x1xf32>
      %50 = arith.cmpf ogt, %48, %49 : vector<128x1xf32>
      %c0_32 = arith.constant 0 : index
      %c0_33 = arith.constant 0 : index
      %51 = vector.load %arg10[%c0_32, %c0_33] : memref<128x1xf32, #tpu.memory_space<vmem>>, vector<128x1xf32>
      %52 = arith.mulf %48, %47 : vector<128x1xf32>
      %53 = arith.subf %51, %52 : vector<128x1xf32>
      %cst_34 = arith.constant 1.000000e+00 : f32
      %54 = vector.broadcast %cst_34 : f32 to vector<128x1xf32>
      %55 = arith.maximumf %48, %54 : vector<128x1xf32>
      %56 = tpu.reciprocal %55 {approx = true} : vector<128x1xf32> -> vector<128x1xf32>
      %57 = arith.mulf %53, %56 : vector<128x1xf32>
      %cst_35 = arith.constant 0.000000e+00 : f32
      %58 = vector.broadcast %cst_35 : f32 to vector<128x1xf32>
      %59 = arith.select %50, %57, %58 : vector<128x1xi1>, vector<128x1xf32>
      %c0_36 = arith.constant 0 : index
      %c0_37 = arith.constant 0 : index
      %60 = vector.load %arg8[%c0_36, %c0_37] : memref<128x1xf32, #tpu.memory_space<vmem>>, vector<128x1xf32>
      tpu.vector_store %arg8[%c0_36, %c0_37], %59 {strides = array<i32>} : memref<128x1xf32, #tpu.memory_space<vmem>>, vector<128x1xf32>,
    } else {
    }
    return
  }
  func.func @transform_0(%arg0: i32, %arg1: i32) -> (i32, i32) {
    %c0_i32 = arith.constant 0 : i32
    %c0_i32_0 = arith.constant 0 : i32
    return %arg0, %c0_i32 : i32, i32
  }
  func.func @transform_1(%arg0: i32, %arg1: i32) -> (i32, i32) {
    %c0_i32 = arith.constant 0 : i32
    %c0_i32_0 = arith.constant 0 : i32
    return %arg1, %c0_i32 : i32, i32
  }
  func.func @transform_2(%arg0: i32, %arg1: i32) -> (i32, i32) {
    %c0_i32 = arith.constant 0 : i32
    %c0_i32_0 = arith.constant 0 : i32
    return %arg0, %c0_i32 : i32, i32
  }
  func.func @transform_3(%arg0: i32, %arg1: i32) -> (i32, i32) {
    %c0_i32 = arith.constant 0 : i32
    %c0_i32_0 = arith.constant 0 : i32
    return %c0_i32, %arg1 : i32, i32
  }
  func.func @transform_4(%arg0: i32, %arg1: i32) -> (i32, i32) {
    %c0_i32 = arith.constant 0 : i32
    %c0_i32_0 = arith.constant 0 : i32
    return %c0_i32, %arg1 : i32, i32
  }
  func.func @transform_5(%arg0: i32, %arg1: i32) -> (i32, i32) {
    %c0_i32 = arith.constant 0 : i32
    %c0_i32_0 = arith.constant 0 : i32
    return %arg0, %c0_i32 : i32, i32
  }
  func.func @transform_6(%arg0: i32, %arg1: i32) -> (i32, i32) {
    %c0_i32 = arith.constant 0 : i32
    %c0_i32_0 = arith.constant 0 : i32
    return %arg0, %c0_i32 : i32, i32
  }
}

</mosaic_0001>

<bundles_post_ra>
// kernel: tpu_custom_call.1
= control target key start
LH: loop header
LB: loop body
LE: loop exit
PB: predicated region body
PF: predicated region fallthrough
CT: control target
= control target key end

     0   :  { %v1136_v1 = vmov 0   ;;  %vm28_vm0 = vcmask 7168   ;;  %v1137_v33 = vmov 0.0   ;;  %v294_v34 = vlaneseq  ;;  %s1872_s1 = inlined_call_operand.vmem [shape: bf16[128,128], index: 1, kind: input, shape index: {}]   ;;  %s1873_s0 = inlined_call_operand.vmem [shape: bf16[128,128], index: 0, kind: input, shape index: {}]   ;;  %s1874_s2 = inlined_call_operand.vmem [shape: s32[128,1], index: 2, kind: input, shape index: {}]   ;;  %s1875_s3 = inlined_call_operand.vmem [shape: s32[1,128], index: 3, kind: input, shape index: {}]   ;;  %s1876_s4 = inlined_call_operand.vmem [shape: f32[1,128], index: 4, kind: input, shape index: {}]   ;;  %s1877_s5 = inlined_call_operand.vmem [shape: f32[128,1], index: 5, kind: input, shape index: {}]   ;;  %s1878_s6 = inlined_call_operand.vmem [shape: f32[128,1], index: 6, kind: output, shape index: {}]  }
   0x1   :  { %v1024_v0 = vld [vmem:[%s1872_s1 + $0x38] sm:$0xff]   ;;  %1023 = vset.pattern.permute.xlu1 %v1136_v1  ;;  %1022 = vset.pattern.permute.xlu0 %v1136_v1  ;;  %v1025_v2 = vld [vmem:[%s1872_s1 + $0x30] sm:$0xff]   ;;  %v1026_v3 = vld [vmem:[%s1872_s1 + $0x28] sm:$0xff]   ;;  %47 = vst.msk [vmem:[#allocation3 + $0x10] sm:$0xff] %vm28_vm0, %v1137_v33 }
   0x2   :  { %972 = vmatprep.subr.bf16.mxu0 %v1024_v0  ;;  %1004 = vmatprep.subr.bf16.mxu1 %v1024_v0  ;;  %v1032_v4 = vld [vmem:[%s1873_s0] sm:$0xff]   ;;  %v367_v7 = vld [vmem:[%s1874_s2 + $0x10] sm:$0xff]  ;;  %v368_v9 = vld [vmem:[%s1874_s2 + $0x18] sm:$0xff]  ;;  %29 = vst.msk [vmem:[#allocation2] sm:$0xff] %vm28_vm0, %v1137_v33  ;;  %v1301_v35 = vshrl.u32 %v294_v34, 7  ;;  %v1304_v37 = vand.u32 127, %v294_v34 }
   0x3   :  { %973 = vmatpush3.bf16.xpose.msra.mxu0 %v1024_v0  ;;  %1012 = vmatpush3.bf16.xpose.msra.mxu1 %v1024_v0  ;;  %v1033_v5 = vld [vmem:[%s1873_s0 + $0x20] sm:$0xff]   ;;  %v366_v10 = vld [vmem:[%s1874_s2 + $0x8] sm:$0xff]  ;;  %v1028_v13 = vld [vmem:[%s1872_s1 + $0x18] sm:$0xff]   ;;  %30 = vst.msk [vmem:[#allocation2 + $0x8] sm:$0xff] %vm28_vm0, %v1137_v33 }
   0x4   :  { %974 = vmatprep.subr.bf16.mxu0 %v1025_v2  ;;  %1005 = vmatprep.subr.bf16.mxu1 %v1025_v2  ;;  %v1027_v6 = vld [vmem:[%s1872_s1 + $0x20] sm:$0xff]   ;;  %v370_v11 = vld [vmem:[%s1874_s2 + $0x28] sm:$0xff]  ;;  %v372_v14 = vld [vmem:[%s1874_s2 + $0x38] sm:$0xff]  ;;  %31 = vst.msk [vmem:[#allocation2 + $0x10] sm:$0xff] %vm28_vm0, %v1137_v33  ;;  %v297_v36 = vadd.s32 16, %v1301_v35  ;;  %v1312_v39 = vadd.s32 80, %v1301_v35  ;;  %vm333_vm6 = vcmp.ne.s32.totalorder %v1301_v35, %v1304_v37 }
   0x5   :  { %988 = vmatprep.mubr.bf16.mxu0 %v1032_v4  ;;  %996 = vmatprep.mubr.bf16.mxu1 %v1033_v5  ;;  %v365_v8 = vld [vmem:[%s1874_s2] sm:$0xff]  ;;  %v371_v15 = vld [vmem:[%s1874_s2 + $0x30] sm:$0xff]  ;;  %v374_v16 = vld [vmem:[%s1874_s2 + $0x48] sm:$0xff]  ;;  %32 = vst.msk [vmem:[#allocation2 + $0x18] sm:$0xff] %vm28_vm0, %v1137_v33  ;;  %v1322_v42 = vadd.s32 64, %v1301_v35  ;;  %v298_v48 = vadd.s32 24, %v1301_v35 }
   0x6   :  { %389 = vperm.xlu1 %1023, %v367_v7   ;;  %383 = vperm.xlu0 %1022, %v365_v8   ;;  %v369_v12 = vld [vmem:[%s1874_s2 + $0x20] sm:$0xff]  ;;  %v1029_v18 = vld [vmem:[%s1872_s1 + $0x10] sm:$0xff]   ;;  %v376_v19 = vld [vmem:[%s1874_s2 + $0x58] sm:$0xff]  ;;  %33 = vst.msk [vmem:[#allocation2 + $0x20] sm:$0xff] %vm28_vm0, %v1137_v33  ;;  %vm335_vm2 = vcmp.ne.s32.totalorder %v297_v36, %v1304_v37  ;;  %vm343_vm3 = vcmp.ne.s32.totalorder %v1312_v39, %v1304_v37  ;;  %v1338_v51 = vadd.s32 8, %v1301_v35  ;;  %v1357_v0 = vadd.s32 88, %v1301_v35 }
   0x7   :  { %v373_v17 = vld [vmem:[%s1874_s2 + $0x40] sm:$0xff]  ;;  %v375_v20 = vld [vmem:[%s1874_s2 + $0x50] sm:$0xff]  ;;  %v378_v21 = vld [vmem:[%s1874_s2 + $0x68] sm:$0xff]  ;;  %34 = vst.msk [vmem:[#allocation2 + $0x28] sm:$0xff] %vm28_vm0, %v1137_v33  ;;  %vm341_vm5 = vcmp.ne.s32.totalorder %v1322_v42, %v1304_v37  ;;  %vm336_vm7 = vcmp.ne.s32.totalorder %v298_v48, %v1304_v37  ;;  %v1361_v1 = vadd.s32 112, %v1301_v35 }
   0x8   :  { %v377_v22 = vld [vmem:[%s1874_s2 + $0x60] sm:$0xff]  ;;  %v1030_v23 = vld [vmem:[%s1872_s1 + $0x8] sm:$0xff]   ;;  %v380_v24 = vld [vmem:[%s1874_s2 + $0x78] sm:$0xff]  ;;  %35 = vst.msk [vmem:[#allocation2 + $0x30] sm:$0xff] %vm28_vm0, %v1137_v33  ;;  %vm334_vm10 = vcmp.ne.s32.totalorder %v1338_v51, %v1304_v37  ;;  %vm344_vm11 = vcmp.ne.s32.totalorder %v1357_v0, %v1304_v37  ;;  %v1455_v51 = vadd.s32 56, %v1301_v35 }
   0x9   :  { %v379_v25 = vld [vmem:[%s1874_s2 + $0x70] sm:$0xff]  ;;  %v1031_v26 = vld [vmem:[%s1872_s1] sm:$0xff]   ;;  %v1034_v27 = vld [vmem:[%s1873_s0 + $0x8] sm:$0xff]   ;;  %36 = vst.msk [vmem:[#allocation2 + $0x38] sm:$0xff] %vm28_vm0, %v1137_v33  ;;  %vm347_vm12 = vcmp.ne.s32.totalorder %v1361_v1, %v1304_v37 }
   0xa   :  { %392 = vperm.xlu1 %1023, %v368_v9   ;;  %386 = vperm.xlu0 %1022, %v366_v10   ;;  %v1035_v28 = vld [vmem:[%s1873_s0 + $0x28] sm:$0xff]   ;;  %v1036_v29 = vld [vmem:[%s1873_s0 + $0x10] sm:$0xff]   ;;  %v1038_v31 = vld [vmem:[%s1873_s0 + $0x18] sm:$0xff]   ;;  %37 = vst.msk [vmem:[#allocation2 + $0x40] sm:$0xff] %vm28_vm0, %v1137_v33 }
   0xb   :  { %975 = vmatpush3.bf16.xpose.msra.mxu0 %v1025_v2  ;;  %1013 = vmatpush3.bf16.xpose.msra.mxu1 %v1025_v2  ;;  %v1037_v30 = vld [vmem:[%s1873_s0 + $0x30] sm:$0xff]   ;;  %v1039_v32 = vld [vmem:[%s1873_s0 + $0x38] sm:$0xff]   ;;  %38 = vst.msk [vmem:[#allocation2 + $0x48] sm:$0xff] %vm28_vm0, %v1137_v33  ;;  %39 = vst.msk [vmem:[#allocation2 + $0x50] sm:$0xff] %vm28_vm0, %v1137_v33 }
   0xc   :  { %976 = vmatprep.subr.bf16.mxu0 %v1026_v3  ;;  %1006 = vmatprep.subr.bf16.mxu1 %v1026_v3  ;;  %40 = vst.msk [vmem:[#allocation2 + $0x58] sm:$0xff] %vm28_vm0, %v1137_v33  ;;  %41 = vst.msk [vmem:[#allocation2 + $0x60] sm:$0xff] %vm28_vm0, %v1137_v33  ;;  %v1309_v38 = vld [vmem:[%s1875_s3] ss:$0 sm:$0xff] }
   0xd   :  { %42 = vst.msk [vmem:[#allocation2 + $0x68] sm:$0xff] %vm28_vm0, %v1137_v33  ;;  %43 = vst.msk [vmem:[#allocation2 + $0x70] sm:$0xff] %vm28_vm0, %v1137_v33  ;;  %v1318_v41 = vld [vmem:[%s1876_s4] ss:$0 sm:$0xff] }
   0xe   :  { %398 = vperm.xlu1 %1023, %v370_v11   ;;  %395 = vperm.xlu0 %1022, %v369_v12   ;;  %44 = vst.msk [vmem:[#allocation2 + $0x78] sm:$0xff] %vm28_vm0, %v1137_v33  ;;  %45 = vst.msk [vmem:[#allocation3] sm:$0xff] %vm28_vm0, %v1137_v33  ;;  %v1375_v11 = vadd.s32 48, %v1301_v35 }
   0xf   :  { %46 = vst.msk [vmem:[#allocation3 + $0x8] sm:$0xff] %vm28_vm0, %v1137_v33  ;;  %48 = vst.msk [vmem:[#allocation3 + $0x18] sm:$0xff] %vm28_vm0, %v1137_v33 }
  0x10   :  { %49 = vst.msk [vmem:[#allocation3 + $0x20] sm:$0xff] %vm28_vm0, %v1137_v33  ;;  %50 = vst.msk [vmem:[#allocation3 + $0x28] sm:$0xff] %vm28_vm0, %v1137_v33  ;;  %vm339_vm15 = vcmp.ne.s32.totalorder %v1375_v11, %v1304_v37 }
  0x11   :  { %51 = vst.msk [vmem:[#allocation3 + $0x30] sm:$0xff] %vm28_vm0, %v1137_v33  ;;  %52 = vst.msk [vmem:[#allocation3 + $0x38] sm:$0xff] %vm28_vm0, %v1137_v33 }
  0x12   :  { %404 = vperm.xlu1 %1023, %v372_v14   ;;  %401 = vperm.xlu0 %1022, %v371_v15   ;;  %53 = vst.msk [vmem:[#allocation3 + $0x40] sm:$0xff] %vm28_vm0, %v1137_v33  ;;  %54 = vst.msk [vmem:[#allocation3 + $0x48] sm:$0xff] %vm28_vm0, %v1137_v33  ;;  %v1384_v14 = vadd.s32 72, %v1301_v35 }
  0x13   :  { %977 = vmatpush3.bf16.xpose.msra.mxu0 %v1026_v3  ;;  %1014 = vmatpush3.bf16.xpose.msra.mxu1 %v1026_v3  ;;  %55 = vst.msk [vmem:[#allocation3 + $0x50] sm:$0xff] %vm28_vm0, %v1137_v33  ;;  %56 = vst.msk [vmem:[#allocation3 + $0x58] sm:$0xff] %vm28_vm0, %v1137_v33 }
  0x14   :  { %978 = vmatprep.subr.bf16.mxu0 %v1027_v6  ;;  %1007 = vmatprep.subr.bf16.mxu1 %v1027_v6  ;;  %57 = vst.msk [vmem:[#allocation3 + $0x60] sm:$0xff] %vm28_vm0, %v1137_v33  ;;  %58 = vst.msk [vmem:[#allocation3 + $0x68] sm:$0xff] %vm28_vm0, %v1137_v33 }
  0x15   :  { %59 = vst.msk [vmem:[#allocation3 + $0x70] sm:$0xff] %vm28_vm0, %v1137_v33  ;;  %60 = vst.msk [vmem:[#allocation3 + $0x78] sm:$0xff] %vm28_vm0, %v1137_v33 }
  0x16   :  { %410 = vperm.xlu1 %1023, %v374_v16   ;;  %407 = vperm.xlu0 %1022, %v373_v17  }
  0x1a   :  { %416 = vperm.xlu1 %1023, %v376_v19   ;;  %413 = vperm.xlu0 %1022, %v375_v20   ;;  %v1402_v20 = vadd.s32 40, %v1301_v35 }
  0x1b   :  { %979 = vmatpush3.bf16.xpose.msra.mxu0 %v1027_v6  ;;  %1015 = vmatpush3.bf16.xpose.msra.mxu1 %v1027_v6 }
  0x1c   :  { %980 = vmatprep.subr.bf16.mxu0 %v1028_v13  ;;  %1008 = vmatprep.subr.bf16.mxu1 %v1028_v13 }
  0x1e   :  { %422 = vperm.xlu1 %1023, %v378_v21   ;;  %419 = vperm.xlu0 %1022, %v377_v22  }
  0x22   :  { %428 = vperm.xlu1 %1023, %v380_v24   ;;  %425 = vperm.xlu0 %1022, %v379_v25   ;;  %v299_v24 = vadd.s32 32, %v1301_v35 }
  0x23   :  { %981 = vmatpush3.bf16.xpose.msra.mxu0 %v1028_v13  ;;  %1016 = vmatpush3.bf16.xpose.msra.mxu1 %v1028_v13 }
  0x24   :  { %982 = vmatprep.subr.bf16.mxu0 %v1029_v18  ;;  %1009 = vmatprep.subr.bf16.mxu1 %v1029_v18 }
  0x2b   :  { %983 = vmatpush3.bf16.xpose.msra.mxu0 %v1029_v18  ;;  %1017 = vmatpush3.bf16.xpose.msra.mxu1 %v1029_v18 }
  0x2c   :  { %984 = vmatprep.subr.bf16.mxu0 %v1030_v23  ;;  %1010 = vmatprep.subr.bf16.mxu1 %v1030_v23 }
  0x33   :  { %985 = vmatpush3.bf16.xpose.msra.mxu0 %v1030_v23  ;;  %1018 = vmatpush3.bf16.xpose.msra.mxu1 %v1030_v23 }
  0x34   :  { %986 = vmatprep.subr.bf16.mxu0 %v1031_v26  ;;  %1011 = vmatprep.subr.bf16.mxu1 %v1031_v26 }
  0x3b   :  { %987 = vmatpush3.bf16.xpose.msra.mxu0 %v1031_v26  ;;  %1019 = vmatpush3.bf16.xpose.msra.mxu1 %v1031_v26 }
  0x42   :  { %989 = vmatmul.mubr.bf16.vlgmr.msra.gmra.mxu0 %v1034_v27  ;;  %997 = vmatmul.mubr.bf16.vlgmr.msra.gmra.mxu1 %v1035_v28 }
  0x43   :  { %992 = vmatprep.mubr.bf16.mxu0 %v1036_v29  ;;  %1000 = vmatprep.mubr.bf16.mxu1 %v1037_v30 }
  0x4a   :  { %993 = vmatmul.mubr.bf16.gmra.mxu0 %v1038_v31  ;;  %1001 = vmatmul.mubr.bf16.gmra.mxu1 %v1039_v32 }
  0x81   :  { %v390_v40 = vpop.permute.xlu1 %389  ;;  %v384_v52 = vpop.permute.xlu0 %383 }
  0x82   :  { %vm436_vm1 = vcmp.eq.s32.totalorder %v390_v40, %v1309_v38  ;;  %vm434_vm9 = vcmp.eq.s32.totalorder %v384_v52, %v1309_v38 }
  0x83   :  { %vm1330_vm4 = vmand %vm436_vm1, %vm335_vm2 }
  0x84   :  { %vm1393_vm13 = vmand %vm434_vm9, %vm333_vm6 }
  0x85   :  { %v393_v62 = vpop.permute.xlu1 %392  ;;  %v387_v12 = vpop.permute.xlu0 %386 }
  0x86   :  { %vm437_vm8 = vcmp.eq.s32.totalorder %v393_v62, %v1309_v38  ;;  %vm435_vm1 = vcmp.eq.s32.totalorder %v387_v12, %v1309_v38  ;;  %v1476_v62 = vadd.s32 96, %v1301_v35 }
  0x87   :  { %vm453_vm14 = vmand %vm437_vm8, %vm336_vm7 }
  0x88   :  { %vm1445_vm9 = vmand %vm435_vm1, %vm334_vm10  ;;  %vm345_vm1 = vcmp.ne.s32.totalorder %v1476_v62, %v1304_v37 }
  0x89   :  { %v399_v36 = vpop.permute.xlu1 %398  ;;  %v396_v40 = vpop.permute.xlu0 %395 }
  0x8a   :  { %vm438_vm8 = vcmp.eq.s32.totalorder %v396_v40, %v1309_v38 }
 0x102   :  { %v990_v43 = vpop.f32.mrf.mxu0  ;;  %v998_v44 = vpop.f32.mrf.mxu1 }
 0x103   :  { %v239_v45 = vadd.f32 %v990_v43, %v1318_v41  ;;  %v1328_v46 = vadd.f32 %v998_v44, %v1318_v41 }
 0x104   :  { %v230_v49 = vpop.f32.mrf.mxu0  ;;  %v262_v50 = vpop.f32.mrf.mxu1 }
 0x105   :  { %v351_v53 = vsel %vm335_vm2, %v239_v45, -1e+30  ;;  %v359_v54 = vsel %vm343_vm3, %v1328_v46, -1e+30  ;;  %v231_v55 = vadd.f32 %v1318_v41, %v230_v49  ;;  %v1346_v56 = vadd.f32 %v1318_v41, %v262_v50 }
 0x106   :  { %v942_v57 = vadd.f32 -14.285714, %v351_v53  ;;  %v950_v58 = vadd.f32 -14.285714, %v359_v54  ;;  %v999_v59 = vpop.f32.mrf.mxu1  ;;  %v484_v60 = vsel %vm1330_vm4, %v239_v45, 0.0  ;;  %v991_v61 = vpop.f32.mrf.mxu0  ;;  %vm342_vm2 = vcmp.ne.s32.totalorder %v1384_v14, %v1304_v37 }
 0x107   :  { %v357_v63 = vsel %vm341_vm5, %v1346_v56, -1e+30  ;;  %502 = vadd.xlane.f32.xlu1 %v484_v60  ;;  %v349_v5 = vsel %vm333_vm6, %v231_v55, -1e+30  ;;  %v242_v7 = vadd.f32 %v991_v61, %v1318_v41  ;;  %v1405_v21 = vadd.f32 %v999_v59, %v1318_v41 }
 0x108   :  { %v599_v2 = vmul.f32 1.442695, %v950_v58  ;;  %v233_v3 = vpop.f32.mrf.mxu0  ;;  %v265_v4 = vpop.f32.mrf.mxu1  ;;  %v948_v6 = vadd.f32 -14.285714, %v357_v63  ;;  %v583_v9 = vmul.f32 1.442695, %v942_v57  ;;  %vm337_vm4 = vcmp.ne.s32.totalorder %v299_v24, %v1304_v37 }
 0x109   :  { %v1372_v8 = vadd.f32 %v1318_v41, %v233_v3  ;;  %v940_v16 = vadd.f32 -14.285714, %v349_v5  ;;  %v352_v22 = vsel %vm336_vm7, %v242_v7, -1e+30  ;;  %v485_v23 = vsel %vm453_vm14, %v242_v7, 0.0 }
 0x10a   :  { %v994_v10 = vpop.f32.mrf.mxu0  ;;  %1040 = vpow2.f32 %v599_v2  ;;  %v595_v17 = vmul.f32 1.442695, %v948_v6  ;;  %v1002_v18 = vpop.f32.mrf.mxu1  ;;  %504 = vadd.xlane.f32.xlu0 %v485_v23  ;;  %v360_v28 = vsel %vm344_vm11, %v1405_v21, -1e+30  ;;  %v482_v30 = vsel %vm1393_vm13, %v231_v55, 0.0 }
 0x10b   :  { %v350_v13 = vsel %vm334_vm10, %v1372_v8, -1e+30  ;;  %1042 = vpow2.f32 %v583_v9  ;;  %v1411_v26 = vadd.f32 %v994_v10, %v1318_v41  ;;  %v1421_v29 = vadd.f32 %v1002_v18, %v1318_v41  ;;  %498 = vadd.xlane.f32.xlu1 %v482_v30  ;;  %vm1471_vm10 = vmand %vm438_vm8, %vm337_vm4 }
 0x10c   :  { %v246_v19 = vpop.f32.mrf.mxu0  ;;  %v941_v25 = vadd.f32 -14.285714, %v350_v13  ;;  %v579_v31 = vmul.f32 1.442695, %v940_v16  ;;  %1044 = vpow2.f32 %v595_v17  ;;  %v943_v32 = vadd.f32 -14.285714, %v352_v22  ;;  %v278_v55 = vpop.f32.mrf.mxu1 }
 0x10d   :  { %v355_v33 = vsel %vm339_vm15, %v1411_v26, -1e+30  ;;  %v363_v43 = vsel %vm347_vm12, %v1421_v29, -1e+30  ;;  %vm338_vm6 = vcmp.ne.s32.totalorder %v1402_v20, %v1304_v37  ;;  %vm439_vm7 = vcmp.eq.s32.totalorder %v399_v36, %v1309_v38 }
 0x10e   :  { %v995_v27 = vpop.f32.mrf.mxu0  ;;  %v581_v44 = vmul.f32 1.442695, %v941_v25  ;;  %v946_v45 = vadd.f32 -14.285714, %v355_v33  ;;  %v951_v48 = vadd.f32 -14.285714, %v360_v28  ;;  %v1450_v49 = vadd.f32 %v1318_v41, %v265_v4  ;;  %vm1486_vm13 = vmand %vm439_vm7, %vm338_vm6  ;;  %v1003_v9 = vpop.f32.mrf.mxu1 }
 0x10f   :  { %v247_v50 = vadd.f32 %v1318_v41, %v246_v19  ;;  %1046 = vpow2.f32 %v579_v31  ;;  %v585_v53 = vmul.f32 1.442695, %v943_v32  ;;  %v954_v54 = vadd.f32 -14.285714, %v363_v43 }
 0x110   :  { %v249_v34 = vpop.f32.mrf.mxu0  ;;  %v358_v57 = vsel %vm342_vm2, %v1450_v49, -1e+30  ;;  %v1462_v58 = vadd.f32 %v995_v27, %v1318_v41  ;;  %v483_v59 = vsel %vm1445_vm9, %v1372_v8, 0.0  ;;  %1048 = vpow2.f32 %v581_v44  ;;  %v281_v31 = vpop.f32.mrf.mxu1 }
 0x111   :  { %v250_v52 = vadd.f32 %v1318_v41, %v249_v34  ;;  %v591_v61 = vmul.f32 1.442695, %v946_v45  ;;  %v1479_v63 = vadd.s32 120, %v1301_v35  ;;  %500 = vadd.xlane.f32.xlu0 %v483_v59  ;;  %v601_v3 = vmul.f32 1.442695, %v951_v48 }
 0x112   :  { %v353_v4 = vsel %vm337_vm4, %v247_v50, -1e+30  ;;  %v486_v5 = vsel %vm1471_vm10, %v247_v50, 0.0  ;;  %1050 = vpow2.f32 %v585_v53  ;;  %v949_v7 = vadd.f32 -14.285714, %v358_v57  ;;  %v402_v50 = vpop.permute.xlu0 %401 }
 0x113   :  { %v487_v6 = vsel %vm1486_vm13, %v250_v52, 0.0  ;;  %v607_v8 = vmul.f32 1.442695, %v954_v54  ;;  %vm340_vm14 = vcmp.ne.s32.totalorder %v1455_v51, %v1304_v37  ;;  %506 = vadd.xlane.f32.xlu1 %v486_v5  ;;  %v1499_v12 = vadd.f32 %v1318_v41, %v278_v55 }
 0x114   :  { %v356_v13 = vsel %vm340_vm14, %v1462_v58, -1e+30  ;;  %1052 = vpow2.f32 %v591_v61  ;;  %v944_v15 = vadd.f32 -14.285714, %v353_v4  ;;  %v1512_v18 = vadd.f32 %v1003_v9, %v1318_v41  ;;  %v405_v61 = vpop.permute.xlu1 %404 }
 0x115   :  { %508 = vadd.xlane.f32.xlu0 %v487_v6  ;;  %1054 = vpow2.f32 %v601_v3  ;;  %v361_v17 = vsel %vm345_vm1, %v1499_v12, -1e+30  ;;  %v597_v19 = vmul.f32 1.442695, %v949_v7  ;;  %v947_v22 = vadd.f32 -14.285714, %v356_v13 }
 0x116   :  { %1056 = vpow2.f32 %v607_v8  ;;  %vm348_vm4 = vcmp.ne.s32.totalorder %v1479_v63, %v1304_v37  ;;  %v587_v25 = vmul.f32 1.442695, %v944_v15  ;;  %v952_v27 = vadd.f32 -14.285714, %v361_v17  ;;  %v408_v57 = vpop.permute.xlu0 %407  ;;  %v466_v15 = vld [vmem:[#allocation3] sm:$0xff] }
 0x117   :  { %v1041_v10 = vpop.eup %1040  ;;  %v364_v24 = vsel %vm348_vm4, %v1512_v18, -1e+30  ;;  %1058 = vpow2.f32 %v597_v19  ;;  %v593_v28 = vmul.f32 1.442695, %v947_v22  ;;  %v1521_v32 = vadd.s32 104, %v1301_v35  ;;  %v470_v19 = vld [vmem:[#allocation3 + $0x20] sm:$0xff] }
 0x118   :  { %v1043_v16 = vpop.eup %1042  ;;  %647 = vadd.xlane.f32.xlu1 %v1041_v10  ;;  %v955_v30 = vadd.f32 -14.285714, %v364_v24  ;;  %v354_v34 = vsel %vm338_vm6, %v250_v52, -1e+30  ;;  %1060 = vpow2.f32 %v587_v25  ;;  %v603_v36 = vmul.f32 1.442695, %v952_v27  ;;  %v411_v6 = vpop.permute.xlu1 %410 }
 0x119   :  { %v1045_v23 = vpop.eup %1044  ;;  %631 = vadd.xlane.f32.xlu0 %v1043_v16  ;;  %v1527_v43 = vadd.f32 %v1318_v41, %v281_v31  ;;  %1062 = vpow2.f32 %v593_v28  ;;  %v945_v45 = vadd.f32 -14.285714, %v354_v34  ;;  %vm346_vm7 = vcmp.ne.s32.totalorder %v1521_v32, %v1304_v37  ;;  %v467_v37 = vld [vmem:[#allocation3 + $0x8] sm:$0xff]  ;;  %v621_v27 = vld [vmem:[#allocation2 + $0x50] sm:$0xff]  ;;  %v619_v34 = vld [vmem:[#allocation2 + $0x40] sm:$0xff] }
 0x11a   :  { %v609_v44 = vmul.f32 1.442695, %v955_v30  ;;  %1064 = vpow2.f32 %v603_v36  ;;  %vm440_vm6 = vcmp.eq.s32.totalorder %v402_v50, %v1309_v38  ;;  %v414_v3 = vpop.permute.xlu0 %413  ;;  %vm442_vm8 = vcmp.eq.s32.totalorder %v408_v57, %v1309_v38  ;;  %v613_v30 = vld [vmem:[#allocation2 + $0x10] sm:$0xff] }
 0x11b   :  { %v362_v20 = vsel %vm346_vm7, %v1527_v43, -1e+30  ;;  %v589_v41 = vmul.f32 1.442695, %v945_v45  ;;  %vm456_vm9 = vmand %vm440_vm6, %vm339_vm15  ;;  %vm444_vm13 = vcmp.eq.s32.totalorder %v414_v3, %v1309_v38  ;;  %vm441_vm6 = vcmp.eq.s32.totalorder %v405_v61, %v1309_v38 }
 0x11c   :  { %643 = vadd.xlane.f32.xlu1 %v1045_v23  ;;  %v1047_v33 = vpop.eup %1046  ;;  %1066 = vpow2.f32 %v609_v44  ;;  %v953_v52 = vadd.f32 -14.285714, %v362_v20  ;;  %v488_v5 = vsel %vm456_vm9, %v1411_v26, 0.0  ;;  %vm458_vm10 = vmand %vm442_vm8, %vm341_vm5  ;;  %v417_v26 = vpop.permute.xlu1 %416  ;;  %vm443_vm8 = vcmp.eq.s32.totalorder %v411_v6, %v1309_v38  ;;  %v471_v23 = vld [vmem:[#allocation3 + $0x28] sm:$0xff]  ;;  %v611_v44 = vld [vmem:[#allocation2] sm:$0xff] }
 0x11d   :  { %627 = vadd.xlane.f32.xlu0 %v1047_v33  ;;  %v1049_v40 = vpop.eup %1048  ;;  %1068 = vpow2.f32 %v589_v41  ;;  %v490_v9 = vsel %vm458_vm10, %v1346_v56, 0.0  ;;  %vm460_vm15 = vmand %vm444_vm13, %vm343_vm3  ;;  %v1608_v41 = vld [vmem:[%s1877_s5 + $0x8] sm:$0xff] }
 0x11e   :  { %v605_v54 = vmul.f32 1.442695, %v953_v52  ;;  %v420_v8 = vpop.permute.xlu0 %419  ;;  %v492_v42 = vsel %vm460_vm15, %v1328_v46, 0.0  ;;  %vm457_vm5 = vmand %vm441_vm6, %vm340_vm14  ;;  %vm445_vm14 = vcmp.eq.s32.totalorder %v417_v26, %v1309_v38  ;;  %v625_v26 = vld [vmem:[#allocation2 + $0x70] sm:$0xff] }
 0x11f   :  { %v1051_v35 = vpop.eup %1050  ;;  %vm446_vm9 = vcmp.eq.s32.totalorder %v420_v8, %v1309_v38  ;;  %v489_v39 = vsel %vm457_vm5, %v1462_v58, 0.0  ;;  %vm459_vm13 = vmand %vm443_vm8, %vm342_vm2 }
 0x120   :  { %629 = vadd.xlane.f32.xlu1 %v1049_v40  ;;  %1070 = vpow2.f32 %v605_v54  ;;  %vm462_vm3 = vmand %vm446_vm9, %vm345_vm1  ;;  %v423_v46 = vpop.permute.xlu1 %422  ;;  %v491_v51 = vsel %vm459_vm13, %v1450_v49, 0.0  ;;  %v1595_v40 = vld [vmem:[%s1877_s5 + $0x10] sm:$0xff]  ;;  %v614_v54 = vld [vmem:[#allocation2 + $0x18] sm:$0xff] }
 0x121   :  { %633 = vadd.xlane.f32.xlu0 %v1051_v35  ;;  %v1053_v47 = vpop.eup %1052  ;;  %v494_v56 = vsel %vm462_vm3, %v1499_v12, 0.0  ;;  %vm461_vm1 = vmand %vm445_vm14, %vm344_vm11  ;;  %vm447_vm6 = vcmp.eq.s32.totalorder %v423_v46, %v1309_v38  ;;  %v469_v12 = vld [vmem:[#allocation3 + $0x18] sm:$0xff]  ;;  %v1601_v35 = vld [vmem:[%s1877_s5] sm:$0xff]  ;;  %vm776_vm11 = vcmp.gt.f32.partialorder %v1595_v40, 0.0 }
 0x122   :  { %v1055_v48 = vpop.eup %1054  ;;  %v426_v10 = vpop.permute.xlu0 %425  ;;  %v493_v14 = vsel %vm461_vm1, %v1405_v21, 0.0  ;;  %vm463_vm2 = vmand %vm447_vm6, %vm346_vm7  ;;  %v838_v52 = vmax.f32 %v1601_v35, 1.0  ;;  %vm775_vm7 = vcmp.gt.f32.partialorder %v1608_v41, 0.0 }
 0x123   :  { %v1057_v53 = vpop.eup %1056  ;;  %vm448_vm10 = vcmp.eq.s32.totalorder %v426_v10, %v1309_v38  ;;  %v495_v1 = vsel %vm463_vm2, %v1527_v43, 0.0 }
 0x124   :  { %639 = vadd.xlane.f32.xlu1 %v1053_v47  ;;  %v1059_v55 = vpop.eup %1058  ;;  %vm464_vm15 = vmand %vm448_vm10, %vm347_vm12  ;;  %v429_v62 = vpop.permute.xlu1 %428  ;;  %v612_v47 = vld [vmem:[#allocation2 + $0x8] sm:$0xff] }
 0x125   :  { %649 = vadd.xlane.f32.xlu0 %v1055_v48  ;;  %v1061_v59 = vpop.eup %1060  ;;  %v496_v58 = vsel %vm464_vm15, %v1421_v29, 0.0  ;;  %vm449_vm9 = vcmp.eq.s32.totalorder %v429_v62, %v1309_v38  ;;  %v468_v29 = vld [vmem:[#allocation3 + $0x10] sm:$0xff]  ;;  %v840_v48 = vmax.f32 %v1595_v40, 1.0  ;;  %v1637_v62 = vld [vmem:[%s1877_s5 + $0x20] sm:$0xff] }
 0x126   :  { %v1063_v60 = vpop.eup %1062  ;;  %vm465_vm12 = vmand %vm449_vm9, %vm348_vm4  ;;  %vm774_vm4 = vcmp.gt.f32.partialorder %v1601_v35, 0.0  ;;  %vm778_vm10 = vcmp.gt.f32.partialorder %v1637_v62, 0.0 }
 0x127   :  { %v1065_v2 = vpop.eup %1064  ;;  %v497_v0 = vsel %vm465_vm12, %v1512_v18, 0.0  ;;  %1072 = vrcp.f32 %v840_v48 }
 0x128   :  { %655 = vadd.xlane.f32.xlu1 %v1057_v53  ;;  %1074 = vrcp.f32 %v838_v52  ;;  %v1678_v52 = vld [vmem:[%s1877_s5 + $0x70] sm:$0xff] }
 0x129   :  { %645 = vadd.xlane.f32.xlu0 %v1059_v55  ;;  %v1067_v4 = vpop.eup %1066  ;;  %v1614_v55 = vld [vmem:[%s1877_s5 + $0x18] sm:$0xff]  ;;  %vm788_vm6 = vcmp.gt.f32.partialorder %v1678_v52, 0.0 }
 0x12a   :  { %v1069_v7 = vpop.eup %1068  ;;  %v841_v3 = vmax.f32 %v1614_v55, 1.0  ;;  %vm777_vm5 = vcmp.gt.f32.partialorder %v1614_v55, 0.0 }
 0x12c   :  { %635 = vadd.xlane.f32.xlu1 %v1061_v59  ;;  %v1620_v59 = vld [vmem:[%s1877_s5 + $0x30] sm:$0xff] }
 0x12d   :  { %641 = vadd.xlane.f32.xlu0 %v1063_v60  ;;  %v1071_v11 = vpop.eup %1070  ;;  %v839_v60 = vmax.f32 %v1608_v41, 1.0  ;;  %v844_v8 = vmax.f32 %v1620_v59, 1.0  ;;  %vm780_vm8 = vcmp.gt.f32.partialorder %v1620_v59, 0.0 }
 0x130   :  { %651 = vadd.xlane.f32.xlu1 %v1065_v2  ;;  %v617_v2 = vld [vmem:[#allocation2 + $0x30] sm:$0xff] }
 0x131   :  { %657 = vadd.xlane.f32.xlu0 %v1067_v4 }
 0x134   :  { %510 = vadd.xlane.f32.xlu1 %v488_v5 }
 0x135   :  { %637 = vadd.xlane.f32.xlu0 %v1069_v7  ;;  %v622_v7 = vld [vmem:[#allocation2 + $0x58] sm:$0xff] }
 0x138   :  { %514 = vadd.xlane.f32.xlu1 %v490_v9 }
 0x139   :  { %653 = vadd.xlane.f32.xlu0 %v1071_v11 }
 0x13c   :  { %518 = vadd.xlane.f32.xlu1 %v492_v42 }
 0x13d   :  { %512 = vadd.xlane.f32.xlu0 %v489_v39  ;;  %v1631_v39 = vld [vmem:[%s1877_s5 + $0x40] sm:$0xff] }
 0x13e   :  { %vm782_vm3 = vcmp.gt.f32.partialorder %v1631_v39, 0.0 }
 0x140   :  { %522 = vadd.xlane.f32.xlu1 %v494_v56 }
 0x141   :  { %516 = vadd.xlane.f32.xlu0 %v491_v51  ;;  %v620_v51 = vld [vmem:[#allocation2 + $0x48] sm:$0xff] }
 0x144   :  { %526 = vadd.xlane.f32.xlu1 %v496_v58 }
 0x145   :  { %520 = vadd.xlane.f32.xlu0 %v493_v14 }
 0x149   :  { %524 = vadd.xlane.f32.xlu0 %v495_v1 }
 0x14d   :  { %528 = vadd.xlane.f32.xlu0 %v497_v0 }
 0x190   :  { %v503_v21 = vpop.xlane.xlu1 %502 }
 0x191   :  { %v532_v49 = vadd.f32 %v503_v21, %v468_v29  ;;  %v615_v29 = vld [vmem:[#allocation2 + $0x20] sm:$0xff]  ;;  %v846_v21 = vmax.f32 %v1631_v39, 1.0 }
 0x193   :  { %549 = vst.msk [vmem:[#allocation3 + $0x10] sm:$0xff] %vm28_vm0, %v532_v49  ;;  %v505_v13 = vpop.xlane.xlu0 %504  ;;  %v1643_v49 = vld [vmem:[%s1877_s5 + $0x50] sm:$0xff] }
 0x194   :  { %v533_v16 = vadd.f32 %v505_v13, %v469_v12  ;;  %v499_v38 = vpop.xlane.xlu1 %498  ;;  %v1649_v13 = vld [vmem:[%s1877_s5 + $0x38] sm:$0xff]  ;;  %vm784_vm13 = vcmp.gt.f32.partialorder %v1643_v49, 0.0 }
 0x195   :  { %v530_v17 = vadd.f32 %v499_v38, %v466_v15  ;;  %vm781_vm14 = vcmp.gt.f32.partialorder %v1649_v13, 0.0 }
 0x196   :  { %550 = vst.msk [vmem:[#allocation3 + $0x18] sm:$0xff] %vm28_vm0, %v533_v16  ;;  %v842_v16 = vmax.f32 %v1637_v62, 1.0 }
 0x197   :  { %547 = vst.msk [vmem:[#allocation3] sm:$0xff] %vm28_vm0, %v530_v17  ;;  %v618_v17 = vld [vmem:[#allocation2 + $0x38] sm:$0xff] }
 0x19a   :  { %v501_v63 = vpop.xlane.xlu0 %500 }
 0x19b   :  { %v531_v18 = vadd.f32 %v501_v63, %v467_v37  ;;  %v848_v63 = vmax.f32 %v1643_v49, 1.0 }
 0x19c   :  { %v507_v22 = vpop.xlane.xlu1 %506 }
 0x19d   :  { %548 = vst.msk [vmem:[#allocation3 + $0x8] sm:$0xff] %vm28_vm0, %v531_v18  ;;  %v534_v24 = vadd.f32 %v507_v22, %v470_v19  ;;  %v623_v22 = vld [vmem:[#allocation2 + $0x60] sm:$0xff] }
 0x19e   :  { %v509_v25 = vpop.xlane.xlu0 %508 }
 0x19f   :  { %551 = vst.msk [vmem:[#allocation3 + $0x20] sm:$0xff] %vm28_vm0, %v534_v24  ;;  %v535_v28 = vadd.f32 %v509_v25, %v471_v23  ;;  %v845_v23 = vmax.f32 %v1649_v13, 1.0  ;;  %v1659_v25 = vld [vmem:[%s1877_s5 + $0x48] sm:$0xff] }
 0x1a0   :  { %vm783_vm1 = vcmp.gt.f32.partialorder %v1659_v25, 0.0 }
 0x1a1   :  { %v648_v31 = vpop.xlane.xlu1 %647  ;;  %552 = vst.msk [vmem:[#allocation3 + $0x28] sm:$0xff] %vm28_vm0, %v535_v28 }
 0x1a2   :  { %v669_v32 = vadd.f32 %v648_v31, %v621_v27  ;;  %v632_v33 = vpop.xlane.xlu0 %631  ;;  %v1661_v27 = vpop.eup %1072  ;;  %v626_v31 = vld [vmem:[#allocation2 + $0x78] sm:$0xff] }
 0x1a3   :  { %v661_v36 = vadd.f32 %v632_v33, %v613_v30 }
 0x1a4   :  { %685 = vst.msk [vmem:[#allocation2 + $0x50] sm:$0xff] %vm28_vm0, %v669_v32  ;;  %v1663_v32 = vpop.eup %1074 }
 0x1a5   :  { %v644_v43 = vpop.xlane.xlu1 %643  ;;  %677 = vst.msk [vmem:[#allocation2 + $0x10] sm:$0xff] %vm28_vm0, %v661_v36 }
 0x1a6   :  { %v667_v45 = vadd.f32 %v644_v43, %v619_v34  ;;  %v628_v20 = vpop.xlane.xlu0 %627  ;;  %v1669_v34 = vld [vmem:[%s1877_s5 + $0x60] sm:$0xff] }
 0x1a7   :  { %v659_v50 = vadd.f32 %v628_v20, %v611_v44  ;;  %v847_v20 = vmax.f32 %v1659_v25, 1.0  ;;  %vm786_vm15 = vcmp.gt.f32.partialorder %v1669_v34, 0.0 }
 0x1a8   :  { %683 = vst.msk [vmem:[#allocation2 + $0x40] sm:$0xff] %vm28_vm0, %v667_v45  ;;  %v472_v45 = vld [vmem:[#allocation3 + $0x30] sm:$0xff] }
 0x1a9   :  { %v630_v53 = vpop.xlane.xlu1 %629  ;;  %675 = vst.msk [vmem:[#allocation2] sm:$0xff] %vm28_vm0, %v659_v50 }
 0x1aa   :  { %v660_v57 = vadd.f32 %v630_v53, %v612_v47  ;;  %v634_v61 = vpop.xlane.xlu0 %633 }
 0x1ab   :  { %v662_v4 = vadd.f32 %v634_v61, %v614_v54  ;;  %v704_v58 = vld [vmem:[#allocation2 + $0x50] sm:$0xff] }
 0x1ac   :  { %676 = vst.msk [vmem:[#allocation2 + $0x8] sm:$0xff] %vm28_vm0, %v660_v57  ;;  %v696_v5 = vld [vmem:[#allocation2 + $0x10] sm:$0xff] }
 0x1ad   :  { %v640_v6 = vpop.xlane.xlu1 %639  ;;  %1076 = vlog2.f32 %v696_v5  ;;  %678 = vst.msk [vmem:[#allocation2 + $0x18] sm:$0xff] %vm28_vm0, %v662_v4  ;;  %v616_v4 = vld [vmem:[#allocation2 + $0x28] sm:$0xff]  ;;  %v1689_v5 = vld [vmem:[%s1877_s5 + $0x58] sm:$0xff] }
 0x1ae   :  { %v665_v9 = vadd.f32 %v640_v6, %v617_v2  ;;  %1078 = vrcp.f32 %v839_v60  ;;  %v650_v11 = vpop.xlane.xlu0 %649  ;;  %v850_v60 = vmax.f32 %v1669_v34, 1.0  ;;  %vm785_vm2 = vcmp.gt.f32.partialorder %v1689_v5, 0.0 }
 0x1af   :  { %v702_v42 = vld [vmem:[#allocation2 + $0x40] sm:$0xff]  ;;  %1080 = vrcp.f32 %v841_v3  ;;  %v670_v10 = vadd.f32 %v650_v11, %v622_v7 }
 0x1b0   :  { %681 = vst.msk [vmem:[#allocation2 + $0x30] sm:$0xff] %vm28_vm0, %v665_v9  ;;  %v694_v56 = vld [vmem:[#allocation2] sm:$0xff]  ;;  %1082 = vrcp.f32 %v844_v8  ;;  %v852_v9 = vmax.f32 %v1678_v52, 1.0 }
 0x1b1   :  { %v656_v46 = vpop.xlane.xlu1 %655  ;;  %1084 = vlog2.f32 %v694_v56  ;;  %686 = vst.msk [vmem:[#allocation2 + $0x58] sm:$0xff] %vm28_vm0, %v670_v10  ;;  %v1699_v10 = vld [vmem:[%s1877_s5 + $0x28] sm:$0xff]  ;;  %v474_v56 = vld [vmem:[#allocation3 + $0x40] sm:$0xff] }
 0x1b2   :  { %v673_v14 = vadd.f32 %v656_v46, %v625_v26  ;;  %1086 = vlog2.f32 %v702_v42  ;;  %v646_v0 = vpop.xlane.xlu0 %645  ;;  %vm779_vm9 = vcmp.gt.f32.partialorder %v1699_v10, 0.0 }
 0x1b3   :  { %v695_v1 = vld [vmem:[#allocation2 + $0x8] sm:$0xff]  ;;  %v668_v12 = vadd.f32 %v646_v0, %v620_v51  ;;  %v792_v51 = vld [vmem:[#allocation3 + $0x10] sm:$0xff]  ;;  %v849_v0 = vmax.f32 %v1689_v5, 1.0 }
 0x1b4   :  { %1088 = vlog2.f32 %v695_v1  ;;  %689 = vst.msk [vmem:[#allocation2 + $0x70] sm:$0xff] %vm28_vm0, %v673_v14  ;;  %v697_v15 = vld [vmem:[#allocation2 + $0x18] sm:$0xff] }
 0x1b5   :  { %1090 = vlog2.f32 %v704_v58  ;;  %v636_v38 = vpop.xlane.xlu1 %635  ;;  %684 = vst.msk [vmem:[#allocation2 + $0x48] sm:$0xff] %vm28_vm0, %v668_v12 }
 0x1b6   :  { %1092 = vlog2.f32 %v697_v15  ;;  %v663_v37 = vadd.f32 %v636_v38, %v615_v29  ;;  %v642_v18 = vpop.xlane.xlu0 %641 }
 0x1b7   :  { %v700_v19 = vld [vmem:[#allocation2 + $0x30] sm:$0xff]  ;;  %1094 = vrcp.f32 %v846_v21  ;;  %v666_v24 = vadd.f32 %v642_v18, %v618_v17 }
 0x1b8   :  { %1096 = vlog2.f32 %v700_v19  ;;  %679 = vst.msk [vmem:[#allocation2 + $0x20] sm:$0xff] %vm28_vm0, %v663_v37  ;;  %v705_v28 = vld [vmem:[#allocation2 + $0x58] sm:$0xff] }
 0x1b9   :  { %1098 = vrcp.f32 %v842_v16  ;;  %v652_v30 = vpop.xlane.xlu1 %651  ;;  %682 = vst.msk [vmem:[#allocation2 + $0x38] sm:$0xff] %vm28_vm0, %v666_v24  ;;  %v624_v16 = vld [vmem:[#allocation2 + $0x68] sm:$0xff] }
 0x1ba   :  { %v671_v33 = vadd.f32 %v652_v30, %v623_v22  ;;  %1100 = vrcp.f32 %v848_v63  ;;  %v1077_v36 = vpop.eup %1076  ;;  %v658_v44 = vpop.xlane.xlu0 %657  ;;  %v843_v63 = vmax.f32 %v1699_v10, 1.0 }
 0x1bb   :  { %v708_v43 = vld [vmem:[#allocation2 + $0x70] sm:$0xff]  ;;  %1102 = vrcp.f32 %v845_v23  ;;  %v1672_v47 = vpop.eup %1078  ;;  %v715_v48 = vmul.f32 0.6931472, %v1077_v36  ;;  %v674_v50 = vadd.f32 %v658_v44, %v626_v31  ;;  %v790_v36 = vld [vmem:[#allocation3] sm:$0xff] }
 0x1bc   :  { %1104 = vlog2.f32 %v705_v28  ;;  %687 = vst.msk [vmem:[#allocation2 + $0x60] sm:$0xff] %vm28_vm0, %v671_v33  ;;  %v1680_v53 = vpop.eup %1080  ;;  %v703_v54 = vld [vmem:[#allocation2 + $0x48] sm:$0xff]  ;;  %v476_v31 = vld [vmem:[#allocation3 + $0x50] sm:$0xff] }
 0x1bd   :  { %1106 = vlog2.f32 %v708_v43  ;;  %v511_v57 = vpop.xlane.xlu1 %510  ;;  %v1683_v61 = vpop.eup %1082  ;;  %v744_v2 = vadd.f32 14.285714, %v715_v48  ;;  %690 = vst.msk [vmem:[#allocation2 + $0x78] sm:$0xff] %vm28_vm0, %v674_v50 }
 0x1be   :  { %1108 = vlog2.f32 %v703_v54  ;;  %v536_v3 = vadd.f32 %v511_v57, %v472_v45  ;;  %v1085_v6 = vpop.eup %1084  ;;  %v638_v8 = vpop.xlane.xlu0 %637 }
 0x1bf   :  { %v698_v7 = vld [vmem:[#allocation2 + $0x20] sm:$0xff]  ;;  %1110 = vrcp.f32 %v847_v20  ;;  %v1087_v11 = vpop.eup %1086  ;;  %v808_v26 = vmul.f32 %v1595_v40, %v744_v2  ;;  %v711_v42 = vmul.f32 0.6931472, %v1085_v6  ;;  %v664_v14 = vadd.f32 %v638_v8, %v616_v4  ;;  %v1728_v8 = vld [vmem:[%s1877_s5 + $0x68] sm:$0xff] }
 0x1c0   :  { %1112 = vlog2.f32 %v698_v7  ;;  %553 = vst.msk [vmem:[#allocation3 + $0x30] sm:$0xff] %vm28_vm0, %v536_v3  ;;  %v701_v58 = vld [vmem:[#allocation2 + $0x38] sm:$0xff]  ;;  %v727_v17 = vmul.f32 0.6931472, %v1087_v11  ;;  %v791_v3 = vld [vmem:[#allocation3 + $0x8] sm:$0xff]  ;;  %vm787_vm12 = vcmp.gt.f32.partialorder %v1728_v8, 0.0 }
 0x1c1   :  { %v1089_v46 = vpop.eup %1088  ;;  %v515_v1 = vpop.xlane.xlu1 %514  ;;  %1114 = vrcp.f32 %v850_v60  ;;  %v824_v21 = vsub.f32 %v792_v51, %v808_v26  ;;  %v742_v12 = vadd.f32 14.285714, %v711_v42  ;;  %680 = vst.msk [vmem:[#allocation2 + $0x28] sm:$0xff] %vm28_vm0, %v664_v14  ;;  %v473_v60 = vld [vmem:[#allocation3 + $0x38] sm:$0xff] }
 0x1c2   :  { %v1091_v29 = vpop.eup %1090  ;;  %v713_v15 = vmul.f32 0.6931472, %v1089_v46  ;;  %1116 = vlog2.f32 %v701_v58  ;;  %v538_v19 = vadd.f32 %v515_v1, %v474_v56  ;;  %v654_v18 = vpop.xlane.xlu0 %653  ;;  %v750_v40 = vadd.f32 14.285714, %v727_v17  ;;  %v478_v56 = vld [vmem:[#allocation3 + $0x60] sm:$0xff]  ;;  %v793_v51 = vld [vmem:[#allocation3 + $0x18] sm:$0xff] }
 0x1c3   :  { %v1093_v38 = vpop.eup %1092  ;;  %v706_v37 = vld [vmem:[#allocation2 + $0x60] sm:$0xff]  ;;  %1118 = vrcp.f32 %v852_v9  ;;  %v872_v23 = vmul.f32 %v1661_v27, %v824_v21  ;;  %v806_v24 = vmul.f32 %v1601_v35, %v742_v12  ;;  %v731_v43 = vmul.f32 0.6931472, %v1091_v29  ;;  %v475_v21 = vld [vmem:[#allocation3 + $0x48] sm:$0xff] }
 0x1c4   :  { %v1705_v22 = vpop.eup %1094  ;;  %v743_v28 = vadd.f32 14.285714, %v713_v15  ;;  %v717_v30 = vmul.f32 0.6931472, %v1093_v38  ;;  %1120 = vlog2.f32 %v706_v37  ;;  %555 = vst.msk [vmem:[#allocation3 + $0x40] sm:$0xff] %vm28_vm0, %v538_v19  ;;  %v672_v44 = vadd.f32 %v654_v18, %v624_v16  ;;  %v709_v57 = vld [vmem:[#allocation2 + $0x78] sm:$0xff] }
 0x1c5   :  { %v1097_v33 = vpop.eup %1096  ;;  %v519_v45 = vpop.xlane.xlu1 %518  ;;  %v888_v27 = vsel %vm776_vm11, %v872_v23, 0.0  ;;  %v822_v48 = vsub.f32 %v790_v36, %v806_v24  ;;  %1122 = vrcp.f32 %v843_v63  ;;  %v752_v58 = vadd.f32 14.285714, %v731_v43 }
 0x1c6   :  { %v1711_v20 = vpop.eup %1098  ;;  %v807_v50 = vmul.f32 %v1608_v41, %v743_v28  ;;  %v745_v54 = vadd.f32 14.285714, %v717_v30  ;;  %904 = vst.msk [vmem:[%s1878_s6 + $0x10] sm:$0xff] %vm28_vm0, %v888_v27  ;;  %v723_v4 = vmul.f32 0.6931472, %v1097_v33  ;;  %688 = vst.msk [vmem:[#allocation2 + $0x68] sm:$0xff] %vm28_vm0, %v672_v44  ;;  %v540_v6 = vadd.f32 %v519_v45, %v476_v31  ;;  %v513_v7 = vpop.xlane.xlu0 %512 }
 0x1c7   :  { %v1718_v2 = vpop.eup %1100  ;;  %v870_v11 = vmul.f32 %v1663_v32, %v822_v48  ;;  %1124 = vrcp.f32 %v849_v0  ;;  %v537_v1 = vadd.f32 %v513_v7, %v473_v60  ;;  %v851_v0 = vmax.f32 %v1728_v8, 1.0  ;;  %v796_v30 = vld [vmem:[#allocation3 + $0x30] sm:$0xff]  ;;  %v477_v27 = vld [vmem:[#allocation3 + $0x58] sm:$0xff] }
 0x1c8   :  { %v1730_v9 = vpop.eup %1102  ;;  %v823_v26 = vsub.f32 %v791_v3, %v807_v50  ;;  %v809_v42 = vmul.f32 %v1614_v55, %v745_v54  ;;  %v748_v14 = vadd.f32 14.285714, %v723_v4  ;;  %1126 = vlog2.f32 %v709_v57  ;;  %557 = vst.msk [vmem:[#allocation3 + $0x50] sm:$0xff] %vm28_vm0, %v540_v6  ;;  %v699_v38 = vld [vmem:[#allocation2 + $0x28] sm:$0xff]  ;;  %v1761_v48 = vld [vmem:[%s1877_s5 + $0x78] sm:$0xff] }
 0x1c9   :  { %v1105_v46 = vpop.eup %1104  ;;  %v523_v29 = vpop.xlane.xlu1 %522  ;;  %v886_v15 = vsel %vm774_vm4, %v870_v11, 0.0  ;;  %1128 = vlog2.f32 %v699_v38  ;;  %v814_v63 = vmul.f32 %v1631_v39, %v750_v40  ;;  %554 = vst.msk [vmem:[#allocation3 + $0x38] sm:$0xff] %vm28_vm0, %v537_v1  ;;  %v816_v41 = vmul.f32 %v1643_v49, %v752_v58  ;;  %v479_v1 = vld [vmem:[#allocation3 + $0x68] sm:$0xff]  ;;  %v481_v49 = vld [vmem:[#allocation3 + $0x78] sm:$0xff] }
 0x1ca   :  { %v1107_v12 = vpop.eup %1106  ;;  %v871_v32 = vmul.f32 %v1672_v47, %v823_v26  ;;  %v825_v16 = vsub.f32 %v793_v51, %v809_v42  ;;  %902 = vst.msk [vmem:[%s1878_s6] sm:$0xff] %vm28_vm0, %v886_v15  ;;  %v812_v37 = vmul.f32 %v1620_v59, %v748_v14  ;;  %v542_v35 = vadd.f32 %v523_v29, %v478_v56  ;;  %v517_v19 = vpop.xlane.xlu0 %516  ;;  %v480_v47 = vld [vmem:[#allocation3 + $0x70] sm:$0xff]  ;;  %v794_v59 = vld [vmem:[#allocation3 + $0x20] sm:$0xff] }
 0x1cb   :  { %v1109_v17 = vpop.eup %1108  ;;  %v798_v31 = vld [vmem:[#allocation3 + $0x40] sm:$0xff]  ;;  %v539_v33 = vadd.f32 %v517_v19, %v475_v21  ;;  %v733_v43 = vmul.f32 0.6931472, %v1105_v46  ;;  %v739_v57 = vmul.f32 0.6931472, %v1107_v12  ;;  %v853_v58 = vmax.f32 %v1761_v48, 1.0 }
 0x1cc   :  { %v1746_v18 = vpop.eup %1110  ;;  %v887_v23 = vsel %vm775_vm7, %v871_v32, 0.0  ;;  %v873_v24 = vmul.f32 %v1680_v53, %v825_v16  ;;  %v729_v28 = vmul.f32 0.6931472, %v1109_v17  ;;  %v828_v44 = vsub.f32 %v796_v30, %v812_v37  ;;  %559 = vst.msk [vmem:[#allocation3 + $0x60] sm:$0xff] %vm28_vm0, %v542_v35 }
 0x1cd   :  { %v1113_v36 = vpop.eup %1112  ;;  %903 = vst.msk [vmem:[%s1878_s6 + $0x8] sm:$0xff] %vm28_vm0, %v887_v23  ;;  %v830_v45 = vsub.f32 %v798_v31, %v814_v63  ;;  %v527_v53 = vpop.xlane.xlu1 %526  ;;  %v707_v3 = vld [vmem:[#allocation2 + $0x68] sm:$0xff]  ;;  %556 = vst.msk [vmem:[#allocation3 + $0x48] sm:$0xff] %vm28_vm0, %v539_v33  ;;  %v756_v21 = vadd.f32 14.285714, %v739_v57  ;;  %vm789_vm11 = vcmp.gt.f32.partialorder %v1761_v48, 0.0 }
 0x1ce   :  { %v1763_v50 = vpop.eup %1114  ;;  %v889_v54 = vsel %vm777_vm5, %v873_v24, 0.0  ;;  %v719_v60 = vmul.f32 0.6931472, %v1113_v36  ;;  %v544_v40 = vadd.f32 %v527_v53, %v480_v47  ;;  %v751_v6 = vadd.f32 14.285714, %v729_v28  ;;  %v521_v55 = vpop.xlane.xlu0 %520 }
 0x1cf   :  { %v1117_v4 = vpop.eup %1116  ;;  %905 = vst.msk [vmem:[%s1878_s6 + $0x18] sm:$0xff] %vm28_vm0, %v889_v54  ;;  %v876_v7 = vmul.f32 %v1683_v61, %v828_v44  ;;  %v878_v11 = vmul.f32 %v1705_v22, %v830_v45  ;;  %1130 = vlog2.f32 %v707_v3  ;;  %v800_v46 = vld [vmem:[#allocation3 + $0x50] sm:$0xff]  ;;  %v541_v51 = vadd.f32 %v521_v55, %v477_v27 }
 0x1d0   :  { %v1774_v26 = vpop.eup %1118  ;;  %v746_v42 = vadd.f32 14.285714, %v719_v60  ;;  %v725_v56 = vmul.f32 0.6931472, %v1117_v4  ;;  %561 = vst.msk [vmem:[#allocation3 + $0x70] sm:$0xff] %vm28_vm0, %v544_v40  ;;  %v832_v22 = vsub.f32 %v800_v46, %v816_v41  ;;  %1132 = vrcp.f32 %v851_v0  ;;  %v797_v24 = vld [vmem:[#allocation3 + $0x38] sm:$0xff] }
 0x1d1   :  { %v892_v14 = vsel %vm780_vm8, %v876_v7, 0.0  ;;  %v894_v61 = vsel %vm782_vm3, %v878_v11, 0.0  ;;  %v1121_v29 = vpop.eup %1120  ;;  %558 = vst.msk [vmem:[#allocation3 + $0x58] sm:$0xff] %vm28_vm0, %v541_v51  ;;  %v753_v39 = vadd.f32 14.285714, %v733_v43  ;;  %v815_v35 = vmul.f32 %v1659_v25, %v751_v6 }
 0x1d2   :  { %v810_v12 = vmul.f32 %v1637_v62, %v746_v42  ;;  %v749_v15 = vadd.f32 14.285714, %v725_v56  ;;  %908 = vst.msk [vmem:[%s1878_s6 + $0x30] sm:$0xff] %vm28_vm0, %v892_v14  ;;  %910 = vst.msk [vmem:[%s1878_s6 + $0x40] sm:$0xff] %vm28_vm0, %v894_v61  ;;  %v735_v32 = vmul.f32 0.6931472, %v1121_v29  ;;  %v880_v16 = vmul.f32 %v1718_v2, %v832_v22  ;;  %v525_v38 = vpop.xlane.xlu0 %524  ;;  %v1795_v17 = vpop.eup %1122 }
 0x1d3   :  { %v543_v19 = vadd.f32 %v525_v38, %v479_v1  ;;  %1134 = vrcp.f32 %v853_v58  ;;  %v820_v36 = vmul.f32 %v1678_v52, %v756_v21  ;;  %v802_v54 = vld [vmem:[#allocation3 + $0x60] sm:$0xff] }
 0x1d4   :  { %v826_v37 = vsub.f32 %v794_v59, %v810_v12  ;;  %v813_v63 = vmul.f32 %v1649_v13, %v749_v15  ;;  %v1125_v47 = vpop.eup %1124  ;;  %v754_v23 = vadd.f32 14.285714, %v735_v32  ;;  %v896_v0 = vsel %vm784_vm13, %v880_v16, 0.0  ;;  %v799_v2 = vld [vmem:[#allocation3 + $0x48] sm:$0xff] }
 0x1d5   :  { %v1127_v28 = vpop.eup %1126  ;;  %912 = vst.msk [vmem:[%s1878_s6 + $0x50] sm:$0xff] %vm28_vm0, %v896_v0  ;;  %v831_v33 = vsub.f32 %v799_v2, %v815_v35  ;;  %560 = vst.msk [vmem:[#allocation3 + $0x68] sm:$0xff] %vm28_vm0, %v543_v19 }
 0x1d6   :  { %v874_v30 = vmul.f32 %v1711_v20, %v826_v37  ;;  %v829_v31 = vsub.f32 %v797_v24, %v813_v63  ;;  %v818_v43 = vmul.f32 %v1669_v34, %v754_v23  ;;  %v817_v20 = vmul.f32 %v1689_v5, %v753_v39  ;;  %v529_v45 = vpop.xlane.xlu0 %528  ;;  %v1129_v41 = vpop.eup %1128  ;;  %v795_v5 = vld [vmem:[#allocation3 + $0x28] sm:$0xff] }
 0x1d7   :  { %v804_v44 = vld [vmem:[#allocation3 + $0x70] sm:$0xff]  ;;  %v879_v57 = vmul.f32 %v1746_v18, %v831_v33  ;;  %v741_v3 = vmul.f32 0.6931472, %v1127_v28  ;;  %v721_v40 = vmul.f32 0.6931472, %v1129_v41  ;;  %v545_v7 = vadd.f32 %v529_v45, %v481_v49 }
 0x1d8   :  { %v890_v53 = vsel %vm778_vm10, %v874_v30, 0.0  ;;  %v877_v27 = vmul.f32 %v1730_v9, %v829_v31  ;;  %v836_v60 = vsub.f32 %v804_v44, %v820_v36  ;;  %v834_v4 = vsub.f32 %v802_v54, %v818_v43  ;;  %v801_v6 = vld [vmem:[#allocation3 + $0x58] sm:$0xff] }
 0x1d9   :  { %906 = vst.msk [vmem:[%s1878_s6 + $0x20] sm:$0xff] %vm28_vm0, %v890_v53  ;;  %v895_v9 = vsel %vm783_vm1, %v879_v57, 0.0  ;;  %v833_v18 = vsub.f32 %v801_v6, %v817_v20  ;;  %v747_v55 = vadd.f32 14.285714, %v721_v40  ;;  %562 = vst.msk [vmem:[#allocation3 + $0x78] sm:$0xff] %vm28_vm0, %v545_v7 }
 0x1da   :  { %v893_v62 = vsel %vm781_vm14, %v877_v27, 0.0  ;;  %v884_v11 = vmul.f32 %v1774_v26, %v836_v60  ;;  %v882_v42 = vmul.f32 %v1763_v50, %v834_v4  ;;  %911 = vst.msk [vmem:[%s1878_s6 + $0x48] sm:$0xff] %vm28_vm0, %v895_v9  ;;  %v757_v56 = vadd.f32 14.285714, %v741_v3 }
 0x1db   :  { %909 = vst.msk [vmem:[%s1878_s6 + $0x38] sm:$0xff] %vm28_vm0, %v893_v62  ;;  %v881_v26 = vmul.f32 %v1125_v47, %v833_v18  ;;  %v811_v46 = vmul.f32 %v1699_v10, %v747_v55 }
 0x1dc   :  { %v1131_v13 = vpop.eup %1130  ;;  %v900_v25 = vsel %vm788_vm6, %v884_v11, 0.0  ;;  %v898_v50 = vsel %vm786_vm15, %v882_v42, 0.0  ;;  %v821_v1 = vmul.f32 %v1761_v48, %v757_v56  ;;  %v803_v21 = vld [vmem:[#allocation3 + $0x68] sm:$0xff] }
 0x1dd   :  { %v737_v51 = vmul.f32 0.6931472, %v1131_v13  ;;  %916 = vst.msk [vmem:[%s1878_s6 + $0x70] sm:$0xff] %vm28_vm0, %v900_v25  ;;  %914 = vst.msk [vmem:[%s1878_s6 + $0x60] sm:$0xff] %vm28_vm0, %v898_v50  ;;  %v897_v52 = vsel %vm785_vm2, %v881_v26, 0.0  ;;  %v1133_v58 = vpop.eup %1132  ;;  %v827_v14 = vsub.f32 %v795_v5, %v811_v46 }
 0x1de   :  { %913 = vst.msk [vmem:[%s1878_s6 + $0x58] sm:$0xff] %vm28_vm0, %v897_v52 }
 0x1df   :  { %v755_v61 = vadd.f32 14.285714, %v737_v51  ;;  %v875_v34 = vmul.f32 %v1795_v17, %v827_v14 }
 0x1e0   :  { %v1135_v29 = vpop.eup %1134  ;;  %v805_v12 = vld [vmem:[#allocation3 + $0x78] sm:$0xff] }
 0x1e1   :  { %v819_v22 = vmul.f32 %v1728_v8, %v755_v61  ;;  %v891_v15 = vsel %vm779_vm9, %v875_v34, 0.0  ;;  %v837_v39 = vsub.f32 %v805_v12, %v821_v1 }
 0x1e2   :  { %907 = vst.msk [vmem:[%s1878_s6 + $0x28] sm:$0xff] %vm28_vm0, %v891_v15 }
 0x1e3   :  { %v835_v59 = vsub.f32 %v803_v21, %v819_v22  ;;  %v885_v32 = vmul.f32 %v1135_v29, %v837_v39 }
 0x1e5   :  { %v883_v10 = vmul.f32 %v1133_v58, %v835_v59  ;;  %v901_v38 = vsel %vm789_vm11, %v885_v32, 0.0 }
 0x1e6   :  { %917 = vst.msk [vmem:[%s1878_s6 + $0x78] sm:$0xff] %vm28_vm0, %v901_v38 }
 0x1e7   :  { %v899_v16 = vsel %vm787_vm12, %v883_v10, 0.0 }
 0x1e8   :  { %915 = vst.msk [vmem:[%s1878_s6 + $0x68] sm:$0xff] %vm28_vm0, %v899_v16 }

</bundles_post_ra>
